<compile_context>
chip_gen: v6e
topology: v6e:2x2x1
jax: 0.10.0
libtpu: 0.0.40
codegen_flags: <defaults>
</compile_context>

<pallas_src>
import functools

import jax
import jax.numpy as jnp
from jax.experimental import pallas as pl
from jax.experimental.pallas import tpu as pltpu

_NEG_INF = -1e30  # finite, bf16/f32-safe stand-in for -inf
_EPS = 1e-5       # torch.nn.LayerNorm default


def _vmem_limit_bytes():
    # ~56 MiB on v7x (64 MiB physical), 100 MiB on v5e/v6e (128 MiB physical).
    try:
        cap = pltpu.get_tpu_info().vmem_capacity_bytes
    except Exception:
        cap = 128 * 1024 * 1024
    return int(min(cap * 7 // 8, 100 * 1024 * 1024))


def _weight_spec(arr):
    """Full-array BlockSpec with a constant block index.

    The block index never changes across the grid, so the weight is DMA'd
    exactly once; single-buffering (pl.Buffered(1)) halves its resident VMEM
    (matters most on v7x's 64 MiB VMEM at large C)."""
    nd = arr.ndim
    idx = lambda *args, _nd=nd: (0,) * _nd
    try:
        return pl.BlockSpec(arr.shape, idx, pipeline_mode=pl.Buffered(1))
    except Exception:  # pallas version without pipeline_mode / Buffered
        return pl.BlockSpec(arr.shape, idx)


def _layernorm(z, g, b):
    mu = jnp.mean(z, axis=-1, keepdims=True)
    var = jnp.mean((z - mu) ** 2, axis=-1, keepdims=True)
    return (z - mu) * jax.lax.rsqrt(var + _EPS) * g + b


# ----------------------------------------------------------------------------
# 1) LN1 + fused QKV projection
# ----------------------------------------------------------------------------
def _qkv_kernel(x_ref, g1_ref, b1_ref, wqkv_ref, q_ref, k_ref, v_ref, *, scale):
    x = x_ref[0]                                           # (tq, C) f32
    C = x.shape[-1]
    h = _layernorm(x, g1_ref[...], b1_ref[...])
    qkv = jnp.dot(h.astype(jnp.bfloat16), wqkv_ref[...],
                  preferred_element_type=jnp.float32)       # (tq, 3C) f32
    # Fold the attention scale into q once; emit bf16 (score matmul operands).
    q_ref[0] = (qkv[:, :C] * scale).astype(jnp.bfloat16)
    k_ref[0] = qkv[:, C:2 * C].astype(jnp.bfloat16)
    v_ref[0] = qkv[:, 2 * C:].astype(jnp.bfloat16)


def run_qkv(x, g1, b1, wqkv, *, scale, t_tile):
    B, T, C = x.shape
    grid = (B, T // t_tile)
    x_spec = pl.BlockSpec((1, t_tile, C), lambda b, i: (b, i, 0))
    out_spec = pl.BlockSpec((1, t_tile, C), lambda b, i: (b, i, 0))
    out_sds = jax.ShapeDtypeStruct((B, T, C), jnp.bfloat16)
    return pl.pallas_call(
        functools.partial(_qkv_kernel, scale=scale),
        out_shape=(out_sds, out_sds, out_sds),
        grid_spec=pltpu.PrefetchScalarGridSpec(
            num_scalar_prefetch=0,
            grid=grid,
            in_specs=[x_spec, _weight_spec(g1), _weight_spec(b1),
                      _weight_spec(wqkv)],
            out_specs=(out_spec, out_spec, out_spec)),
        compiler_params=pltpu.CompilerParams(
            dimension_semantics=("parallel", "parallel"),
            vmem_limit_bytes=_vmem_limit_bytes()),
    )(x, g1, b1, wqkv)


# ----------------------------------------------------------------------------
# 2) Flash-style causal multi-head attention + residual
# ----------------------------------------------------------------------------
def _flash_attn_kernel(x_ref, q_ref, k_ref, v_ref, o_ref,
                       m_sc, l_sc, acc_sc, *, n_head, t_tile):
    i = pl.program_id(1)   # query tile
    j = pl.program_id(2)   # kv tile (reduction / "arbitrary" axis)
    C = q_ref.shape[2]
    hs = C // n_head

    @pl.when(j == 0)
    def _init():
        m_sc[...] = jnp.full_like(m_sc, _NEG_INF)
        l_sc[...] = jnp.zeros_like(l_sc)
        acc_sc[...] = jnp.zeros_like(acc_sc)

    # Causal tile skip: KV tiles strictly above the diagonal contribute
    # nothing (their K/V DMA is also suppressed by the clamped index_map).
    @pl.when(j <= i)
    def _compute():
        q = q_ref[0].reshape(t_tile, n_head, hs)            # bf16
        k = k_ref[0].reshape(t_tile, n_head, hs)
        v = v_ref[0].reshape(t_tile, n_head, hs)
        qh = pltpu.einshape("thd->htd", q)                   # (H, tq, hs)
        kh = pltpu.einshape("thd->htd", k)
        vh = pltpu.einshape("thd->htd", v)

        s = jnp.einsum("htd,hsd->hts", qh, kh,
                       preferred_element_type=jnp.float32)   # (H, tq, tkv) f32

        # Mask is all-True below the diagonal, so only the diagonal tile is
        # actually affected; the select is tiny next to the score matmul.
        row = jax.lax.broadcasted_iota(jnp.int32, (t_tile, t_tile), 0) + i * t_tile
        col = jax.lax.broadcasted_iota(jnp.int32, (t_tile, t_tile), 1) + j * t_tile
        s = jnp.where((col <= row)[None], s, _NEG_INF)

        m_prev = m_sc[...]
        m_new = jnp.maximum(m_prev, jnp.max(s, axis=-1, keepdims=True))
        alpha = jnp.exp(m_prev - m_new)
        e = jnp.exp(s - m_new)                               # unnormalized
        l_sc[...] = alpha * l_sc[...] + jnp.sum(e, axis=-1, keepdims=True)
        acc_sc[...] = alpha * acc_sc[...] + jnp.einsum(
            "hts,hsd->htd", e.astype(jnp.bfloat16), vh,
            preferred_element_type=jnp.float32)
        m_sc[...] = m_new

    @pl.when(j == pl.num_programs(2) - 1)
    def _finalize():
        # Deferred softmax normalization: scale the (H, tq, hs) accumulator
        # once instead of the (H, tq, tkv) probabilities every step.
        attn = acc_sc[...] * pl.reciprocal(l_sc[...], approx=True)
        attn = pltpu.einshape("htd->thd", attn).reshape(t_tile, C)
        o_ref[0] = x_ref[0] + attn                           # fused residual


def run_flash_attn(x, q, k, v, *, n_head, t_tile):
    B, T, C = x.shape
    n_t = T // t_tile
    hs = C // n_head
    q_spec = pl.BlockSpec((1, t_tile, C), lambda b, i, j: (b, i, 0))
    # Clamp the KV block index for skipped (j > i) tiles so no new DMA fires.
    kv_spec = pl.BlockSpec((1, t_tile, C),
                           lambda b, i, j: (b, jnp.minimum(i, j), 0))
    return pl.pallas_call(
        functools.partial(_flash_attn_kernel, n_head=n_head, t_tile=t_tile),
        out_shape=jax.ShapeDtypeStruct((B, T, C), jnp.float32),
        grid_spec=pltpu.PrefetchScalarGridSpec(
            num_scalar_prefetch=0,
            grid=(B, n_t, n_t),
            in_specs=[q_spec,            # x (residual)
                      q_spec,            # q
                      kv_spec,           # k
                      kv_spec],          # v
            out_specs=pl.BlockSpec((1, t_tile, C), lambda b, i, j: (b, i, 0)),
            scratch_shapes=[pltpu.VMEM((n_head, t_tile, 1), jnp.float32),
                            pltpu.VMEM((n_head, t_tile, 1), jnp.float32),
                            pltpu.VMEM((n_head, t_tile, hs), jnp.float32)]),
        compiler_params=pltpu.CompilerParams(
            dimension_semantics=("parallel", "parallel", "arbitrary"),
            vmem_limit_bytes=_vmem_limit_bytes()),
    )(x, q, k, v)


# ----------------------------------------------------------------------------
# 3) LN2 + feed-forward + residual (row-tiled)
# ----------------------------------------------------------------------------
def _ffn_kernel(x_ref, g2_ref, b2_ref, w1_ref, fb1_ref, w2_ref, fb2_ref, o_ref):
    x = x_ref[...]                                           # (tm, C) f32
    h = _layernorm(x, g2_ref[...], b2_ref[...])
    f = jnp.dot(h.astype(jnp.bfloat16), w1_ref[...],
                preferred_element_type=jnp.float32) + fb1_ref[...]
    f = jnp.maximum(f, 0.0)
    f = jnp.dot(f.astype(jnp.bfloat16), w2_ref[...],
                preferred_element_type=jnp.float32) + fb2_ref[...]
    o_ref[...] = x + f


def run_ffn(x2d, g2, b2, w1, fb1, w2, fb2, *, tm=256):
    M, C = x2d.shape
    tm = min(tm, M)
    assert M % tm == 0
    return pl.pallas_call(
        _ffn_kernel,
        out_shape=jax.ShapeDtypeStruct((M, C), jnp.float32),
        grid_spec=pltpu.PrefetchScalarGridSpec(
            num_scalar_prefetch=0,
            grid=(M // tm,),
            in_specs=[pl.BlockSpec((tm, C), lambda i: (i, 0)),
                      _weight_spec(g2), _weight_spec(b2),
                      _weight_spec(w1), _weight_spec(fb1),
                      _weight_spec(w2), _weight_spec(fb2)],
            out_specs=pl.BlockSpec((tm, C), lambda i: (i, 0))),
        compiler_params=pltpu.CompilerParams(
            dimension_semantics=("parallel",),
            vmem_limit_bytes=_vmem_limit_bytes()),
    )(x2d, g2, b2, w1, fb1, w2, fb2)


# ----------------------------------------------------------------------------
# 4) Final LM head: tiled (B*T, C) @ (C, V), bf16 activations
# ----------------------------------------------------------------------------
def _head_kernel(x_ref, w_ref, o_ref):
    o_ref[...] = jnp.dot(x_ref[...], w_ref[...],
                         preferred_element_type=jnp.float32)


def run_head(x2d_bf16, w_head, *, tm=512, tn=512):
    M, C = x2d_bf16.shape
    V = w_head.shape[1]
    tm = min(tm, M)
    tn = min(tn, V)
    grid = (pl.cdiv(M, tm), pl.cdiv(V, tn))
    # K = C is kept whole (embedding dims are modest); for very large C add an
    # "arbitrary" K axis with a VMEM f32 accumulator.
    return pl.pallas_call(
        _head_kernel,
        out_shape=jax.ShapeDtypeStruct((M, V), jnp.float32),
        grid_spec=pltpu.PrefetchScalarGridSpec(
            num_scalar_prefetch=0,
            grid=grid,
            in_specs=[pl.BlockSpec((tm, C), lambda i, j: (i, 0)),
                      pl.BlockSpec((C, tn), lambda i, j: (0, j))],
            out_specs=pl.BlockSpec((tm, tn), lambda i, j: (i, j))),
        compiler_params=pltpu.CompilerParams(
            dimension_semantics=("parallel", "parallel"),
            vmem_limit_bytes=_vmem_limit_bytes()),
    )(x2d_bf16, w_head)


# ----------------------------------------------------------------------------
# Full model forward
# ----------------------------------------------------------------------------
def generative_transformer_forward(tokens, weights, n_head, *, t_tile=None):
    """tokens: (B, T) int32 -> logits (B, T, vocab_size)."""
    B, T = tokens.shape
    tok_emb = weights["tok_emb"]        # (V, C) f32
    pos_emb = weights["pos_emb"]        # (block_size, C) f32

    # Embedding lookup is glue (gather); the hot path is the Pallas kernels.
    x = tok_emb[tokens] + pos_emb[jnp.arange(T)][None, :, :]   # (B, T, C) f32
    C = x.shape[-1]
    scale = float(C) ** -0.5            # torch Head scales by n_embed ** -0.5

    if t_tile is None:
        t_tile = min(256, T)
    assert T % t_tile == 0

    for blk in weights["blocks"]:
        q, k, v = run_qkv(x, blk["g1"], blk["b1"], blk["wqkv"],
                          scale=scale, t_tile=t_tile)
        x = run_flash_attn(x, q, k, v, n_head=n_head, t_tile=t_tile)
        x = run_ffn(x.reshape(B * T, C), blk["g2"], blk["b2"],
                    blk["w1"], blk["fb1"], blk["w2"], blk["fb2"]).reshape(B, T, C)

    logits = run_head(x.reshape(B * T, C).astype(jnp.bfloat16),
                      weights["w_head"])
    return logits.reshape(B, T, -1)


# ----------------------------------------------------------------------------
# Pure-JAX f32 reference (same math) for a correctness check.
# ----------------------------------------------------------------------------
def _reference_forward(tokens, weights, n_head):
    B, T = tokens.shape
    x = weights["tok_emb"][tokens] + weights["pos_emb"][jnp.arange(T)][None]

    def ln(z, g, b):
        mu = jnp.mean(z, axis=-1, keepdims=True)
        var = jnp.mean((z - mu) ** 2, axis=-1, keepdims=True)
        return (z - mu) / jnp.sqrt(var + _EPS) * g + b

    for p in weights["blocks"]:
        C = x.shape[-1]
        hs = C // n_head
        h = ln(x, p["g1"], p["b1"])
        qkv = h @ p["wqkv"].astype(jnp.float32)
        q, k, v = qkv[..., :C], qkv[..., C:2 * C], qkv[..., 2 * C:]
        mask = jnp.tril(jnp.ones((T, T), bool))
        outs = []
        for hi in range(n_head):
            qh = q[..., hi * hs:(hi + 1) * hs]
            kh = k[..., hi * hs:(hi + 1) * hs]
            vh = v[..., hi * hs:(hi + 1) * hs]
            s = jnp.einsum("btd,bsd->bts", qh, kh) * (C ** -0.5)
            s = jnp.where(mask, s, -jnp.inf)
            outs.append(jax.nn.softmax(s, axis=-1) @ vh)
        x = x + jnp.concatenate(outs, axis=-1)
        h2 = ln(x, p["g2"], p["b2"])
        f = jnp.maximum(h2 @ p["w1"].astype(jnp.float32) + p["fb1"], 0.0)
        f = f @ p["w2"].astype(jnp.float32) + p["fb2"]
        x = x + f
    return x @ weights["w_head"].astype(jnp.float32)


# ----------------------------------------------------------------------------
# Deterministic parameter construction (matmul weights stored in bf16)
# ----------------------------------------------------------------------------
def init_weights(key, vocab_size, n_embd, block_size, n_head, n_blocks):
    ks = iter(jax.random.split(key, 4 + 8 * n_blocks))

    def normal(shape, dtype=jnp.float32, scale=0.02):
        return (scale * jax.random.normal(next(ks), shape)).astype(dtype)

    hidden = 4 * n_embd
    weights = {
        "tok_emb": normal((vocab_size, n_embd)),
        "pos_emb": normal((block_size, n_embd)),
        "w_head": normal((n_embd, vocab_size), jnp.bfloat16),
        "blocks": [],
    }
    for _ in range(n_blocks):
        blk = {
            "g1": jnp.ones((1, n_embd), jnp.float32),
            "b1": jnp.zeros((1, n_embd), jnp.float32),
            # fused [Wq | Wk | Wv]  (bias-free, as in the torch Head)
            "wqkv": normal((n_embd, 3 * n_embd), jnp.bfloat16),
            "g2": jnp.ones((1, n_embd), jnp.float32),
            "b2": jnp.zeros((1, n_embd), jnp.float32),
            "w1": normal((n_embd, hidden), jnp.bfloat16),
            "fb1": normal((1, hidden)),
            "w2": normal((hidden, n_embd), jnp.bfloat16),
            "fb2": normal((1, n_embd)),
        }
        weights["blocks"].append(blk)
    return weights


if __name__ == "__main__":
    # Small, lane-dense config; T=16 with t_tile=8 exercises the multi-tile
    # flash path (running stats, causal tile skip, clamped KV DMA).
    vocab_size, n_embd, block_size, n_head, n_blocks = 128, 128, 16, 4, 2
    B, T = 2, 16

    key = jax.random.PRNGKey(0)
    wkey, tkey = jax.random.split(key)
    weights = init_weights(wkey, vocab_size, n_embd, block_size, n_head, n_blocks)
    tokens = jax.random.randint(tkey, (B, T), 0, vocab_size, dtype=jnp.int32)

    logits = generative_transformer_forward(tokens, weights, n_head, t_tile=8)
    logits = jax.block_until_ready(logits)

    ref = _reference_forward(tokens, weights, n_head)
    assert logits.shape == (B, T, vocab_size)
    # bf16 matmul operands + approx reciprocal => loose (tight-in-practice)
    # tolerance against the all-f32 reference.
    assert jnp.allclose(logits, ref, atol=2e-2, rtol=2e-2), "mismatch vs reference"

    print("KERNEL_OK")
</pallas_src>

<mosaic_0001>
module attributes {stable_mosaic.version = 11 : i64} {
  func.func @_qkv_kernel(%arg0: i32, %arg1: i32, %arg2: memref<1x8x128xf32, #tpu.memory_space<vmem>>, %arg3: memref<1x128xf32, #tpu.memory_space<vmem>>, %arg4: memref<1x128xf32, #tpu.memory_space<vmem>>, %arg5: memref<128x384xbf16, #tpu.memory_space<vmem>>, %arg6: memref<1x8x128xbf16, #tpu.memory_space<vmem>>, %arg7: memref<1x8x128xbf16, #tpu.memory_space<vmem>>, %arg8: memref<1x8x128xbf16, #tpu.memory_space<vmem>>) attributes {dimension_semantics = [#tpu.dimension_semantics<parallel>, #tpu.dimension_semantics<parallel>], iteration_bounds = array<i64: 2, 2>, scalar_prefetch = 0 : i64, scratch_operands = 0 : i64, tpu.core_type = #tpu.core_type<tc>, window_params = [{transform_indices = @transform_0, window_bounds = array<i64: 1, 8, 128>}, {pipeline_mode = #tpu.pipeline_mode<synchronous>, transform_indices = @transform_1, window_bounds = array<i64: 1, 128>}, {pipeline_mode = #tpu.pipeline_mode<synchronous>, transform_indices = @transform_2, window_bounds = array<i64: 1, 128>}, {pipeline_mode = #tpu.pipeline_mode<synchronous>, transform_indices = @transform_3, window_bounds = array<i64: 128, 384>}, {transform_indices = @transform_4, window_bounds = array<i64: 1, 8, 128>}, {transform_indices = @transform_5, window_bounds = array<i64: 1, 8, 128>}, {transform_indices = @transform_6, window_bounds = array<i64: 1, 8, 128>}]} {
    %c0 = arith.constant 0 : index
    %c0_0 = arith.constant 0 : index
    %c0_1 = arith.constant 0 : index
    %0 = vector.load %arg2[%c0, %c0_0, %c0_1] : memref<1x8x128xf32, #tpu.memory_space<vmem>>, vector<1x8x128xf32>
    %1 = vector.shape_cast %0 : vector<1x8x128xf32> to vector<8x128xf32>
    %c0_2 = arith.constant 0 : index
    %c0_3 = arith.constant 0 : index
    %2 = vector.load %arg3[%c0_2, %c0_3] : memref<1x128xf32, #tpu.memory_space<vmem>>, vector<1x128xf32>
    %c0_4 = arith.constant 0 : index
    %c0_5 = arith.constant 0 : index
    %3 = vector.load %arg4[%c0_4, %c0_5] : memref<1x128xf32, #tpu.memory_space<vmem>>, vector<1x128xf32>
    %cst = arith.constant dense<0.000000e+00> : vector<8xf32>
    %4 = vector.multi_reduction <add>, %1, %cst [1] : vector<8x128xf32> to vector<8xf32>
    %5 = vector.shape_cast %4 : vector<8xf32> to vector<8x1xf32>
    %cst_6 = arith.constant 1.280000e+02 : f32
    %6 = vector.broadcast %cst_6 : f32 to vector<8x1xf32>
    %7 = arith.divf %5, %6 : vector<8x1xf32>
    %8 = vector.broadcast %7 : vector<8x1xf32> to vector<8x128xf32>
    %9 = arith.subf %1, %8 : vector<8x128xf32>
    %10 = arith.mulf %9, %9 : vector<8x128xf32>
    %cst_7 = arith.constant dense<0.000000e+00> : vector<8xf32>
    %11 = vector.multi_reduction <add>, %10, %cst_7 [1] : vector<8x128xf32> to vector<8xf32>
    %12 = vector.shape_cast %11 : vector<8xf32> to vector<8x1xf32>
    %cst_8 = arith.constant 1.280000e+02 : f32
    %13 = vector.broadcast %cst_8 : f32 to vector<8x1xf32>
    %14 = arith.divf %12, %13 : vector<8x1xf32>
    %15 = vector.broadcast %7 : vector<8x1xf32> to vector<8x128xf32>
    %16 = arith.subf %1, %15 : vector<8x128xf32>
    %cst_9 = arith.constant 9.99999974E-6 : f32
    %17 = vector.broadcast %cst_9 : f32 to vector<8x1xf32>
    %18 = arith.addf %14, %17 : vector<8x1xf32>
    %19 = math.rsqrt %18 : vector<8x1xf32>
    %20 = vector.broadcast %19 : vector<8x1xf32> to vector<8x128xf32>
    %21 = arith.mulf %16, %20 : vector<8x128xf32>
    %22 = vector.broadcast %2 : vector<1x128xf32> to vector<8x128xf32>
    %23 = arith.mulf %21, %22 : vector<8x128xf32>
    %24 = vector.broadcast %3 : vector<1x128xf32> to vector<8x128xf32>
    %25 = arith.addf %23, %24 : vector<8x128xf32>
    %26 = arith.truncf %25 : vector<8x128xf32> to vector<8x128xbf16>
    %c0_10 = arith.constant 0 : index
    %c0_11 = arith.constant 0 : index
    %27 = vector.load %arg5[%c0_10, %c0_11] : memref<128x384xbf16, #tpu.memory_space<vmem>>, vector<128x384xbf16>
    %cst_12 = arith.constant dense<0.000000e+00> : vector<8x384xf32>
    %28 = tpu.matmul %26, %27, %cst_12 {dimension_numbers = #tpu.dot_dimension_numbers<[1], [0], [0], [1], [0, 0, 1, 1], [], []>} : vector<8x128xbf16>, vector<128x384xbf16>, vector<8x384xf32> -> vector<8x384xf32>
    %29 = vector.extract_strided_slice %28 {offsets = [0, 0], sizes = [8, 128], strides = [1, 1]} : vector<8x384xf32> to vector<8x128xf32>
    %cst_13 = arith.constant 0.0883883461 : f32
    %30 = vector.broadcast %cst_13 : f32 to vector<8x128xf32>
    %31 = arith.mulf %29, %30 : vector<8x128xf32>
    %32 = arith.truncf %31 : vector<8x128xf32> to vector<8x128xbf16>
    %c0_14 = arith.constant 0 : index
    %c0_15 = arith.constant 0 : index
    %c0_16 = arith.constant 0 : index
    %33 = vector.load %arg6[%c0_14, %c0_15, %c0_16] : memref<1x8x128xbf16, #tpu.memory_space<vmem>>, vector<1x8x128xbf16>
    %34 = vector.shape_cast %33 : vector<1x8x128xbf16> to vector<8x128xbf16>
    %35 = vector.shape_cast %32 : vector<8x128xbf16> to vector<1x8x128xbf16>
    tpu.vector_store %arg6[%c0_14, %c0_15, %c0_16], %35 {strides = array<i32>} : memref<1x8x128xbf16, #tpu.memory_space<vmem>>, vector<1x8x128xbf16>,
    %36 = vector.extract_strided_slice %28 {offsets = [0, 128], sizes = [8, 128], strides = [1, 1]} : vector<8x384xf32> to vector<8x128xf32>
    %37 = arith.truncf %36 : vector<8x128xf32> to vector<8x128xbf16>
    %c0_17 = arith.constant 0 : index
    %c0_18 = arith.constant 0 : index
    %c0_19 = arith.constant 0 : index
    %38 = vector.load %arg7[%c0_17, %c0_18, %c0_19] : memref<1x8x128xbf16, #tpu.memory_space<vmem>>, vector<1x8x128xbf16>
    %39 = vector.shape_cast %38 : vector<1x8x128xbf16> to vector<8x128xbf16>
    %40 = vector.shape_cast %37 : vector<8x128xbf16> to vector<1x8x128xbf16>
    tpu.vector_store %arg7[%c0_17, %c0_18, %c0_19], %40 {strides = array<i32>} : memref<1x8x128xbf16, #tpu.memory_space<vmem>>, vector<1x8x128xbf16>,
    %41 = vector.extract_strided_slice %28 {offsets = [0, 256], sizes = [8, 128], strides = [1, 1]} : vector<8x384xf32> to vector<8x128xf32>
    %42 = arith.truncf %41 : vector<8x128xf32> to vector<8x128xbf16>
    %c0_20 = arith.constant 0 : index
    %c0_21 = arith.constant 0 : index
    %c0_22 = arith.constant 0 : index
    %43 = vector.load %arg8[%c0_20, %c0_21, %c0_22] : memref<1x8x128xbf16, #tpu.memory_space<vmem>>, vector<1x8x128xbf16>
    %44 = vector.shape_cast %43 : vector<1x8x128xbf16> to vector<8x128xbf16>
    %45 = vector.shape_cast %42 : vector<8x128xbf16> to vector<1x8x128xbf16>
    tpu.vector_store %arg8[%c0_20, %c0_21, %c0_22], %45 {strides = array<i32>} : memref<1x8x128xbf16, #tpu.memory_space<vmem>>, vector<1x8x128xbf16>,
    return
  }
  func.func @transform_0(%arg0: i32, %arg1: i32) -> (i32, i32, i32) {
    %c0_i32 = arith.constant 0 : i32
    %c0_i32_0 = arith.constant 0 : i32
    return %arg0, %arg1, %c0_i32 : i32, i32, i32
  }
  func.func @transform_1(%arg0: i32, %arg1: i32) -> (i32, i32) {
    %c0_i32 = arith.constant 0 : i32
    %c0_i32_0 = arith.constant 0 : i32
    %c0_i32_1 = arith.constant 0 : i32
    return %c0_i32, %c0_i32_0 : i32, i32
  }
  func.func @transform_2(%arg0: i32, %arg1: i32) -> (i32, i32) {
    %c0_i32 = arith.constant 0 : i32
    %c0_i32_0 = arith.constant 0 : i32
    %c0_i32_1 = arith.constant 0 : i32
    return %c0_i32, %c0_i32_0 : i32, i32
  }
  func.func @transform_3(%arg0: i32, %arg1: i32) -> (i32, i32) {
    %c0_i32 = arith.constant 0 : i32
    %c0_i32_0 = arith.constant 0 : i32
    %c0_i32_1 = arith.constant 0 : i32
    return %c0_i32, %c0_i32_0 : i32, i32
  }
  func.func @transform_4(%arg0: i32, %arg1: i32) -> (i32, i32, i32) {
    %c0_i32 = arith.constant 0 : i32
    %c0_i32_0 = arith.constant 0 : i32
    return %arg0, %arg1, %c0_i32 : i32, i32, i32
  }
  func.func @transform_5(%arg0: i32, %arg1: i32) -> (i32, i32, i32) {
    %c0_i32 = arith.constant 0 : i32
    %c0_i32_0 = arith.constant 0 : i32
    return %arg0, %arg1, %c0_i32 : i32, i32, i32
  }
  func.func @transform_6(%arg0: i32, %arg1: i32) -> (i32, i32, i32) {
    %c0_i32 = arith.constant 0 : i32
    %c0_i32_0 = arith.constant 0 : i32
    return %arg0, %arg1, %c0_i32 : i32, i32, i32
  }
}

</mosaic_0001>

<bundles_post_ra>
// kernel: tpu_custom_call.1
= control target key start
LH: loop header
LB: loop body
LE: loop exit
PB: predicated region body
PF: predicated region fallthrough
CT: control target
= control target key end

     0   :  { %s1553_s0 = inlined_call_operand.hbm [shape: f32[2,16,128], index: 0, kind: input, shape index: {}]   ;;  %s1554_s1 = inlined_call_operand.vmem [shape: f32[1,128], index: 1, kind: input, shape index: {}]   ;;  %s1555_s2 = inlined_call_operand.vmem [shape: f32[1,128], index: 2, kind: input, shape index: {}]   ;;  %s1556_s3 = inlined_call_operand.hbm [shape: bf16[128,384], index: 3, kind: input, shape index: {}]   ;;  %s1557_s4 = inlined_call_operand.hbm [shape: bf16[2,16,128], index: 4, kind: output, shape index: {0}]   ;;  %s1558_s5 = inlined_call_operand.hbm [shape: bf16[2,16,128], index: 5, kind: output, shape index: {1}]   ;;  %s1559_s6 = inlined_call_operand.hbm [shape: bf16[2,16,128], index: 6, kind: output, shape index: {2}]  }
   0x1   :  { %1570 = sst [smem:[#allocation19_spill]] %s1556_s3 }
   0x2   :  { %1571 = sst [smem:[#allocation20_spill]] %s1557_s4 }
   0x3   :  { %1572 = sst [smem:[#allocation21_spill]] %s1558_s5 }
   0x4   :  { %1573 = sst [smem:[#allocation22_spill]] %s1559_s6 }
   0x5   :  { %12 = vsyncpa [#allocation3], 0 }
   0x6   :  { %14 = vsyncpa [#allocation3 + $0x1], 0 }
   0x7   :  { %15 = vsyncpa [#allocation6], 0 }
   0x8   :  { %16 = vsyncpa [#allocation4], 0 }
   0x9   :  { %18 = vsyncpa [#allocation4 + $0x1], 0 }
   0xa   :  { %19 = vsyncpa [#allocation9], 0 }
   0xb   :  { %21 = vsyncpa [#allocation9 + $0x1], 0  ;;  %s1292_s21 = smov 0   ;;  %s1294_s22 = smov 0  }
   0xc   :  { %s1296_s23 = smov 0   ;;  %s1298_s24 = smov 0  }
   0xd   :  { %s1300_s25 = smov 0   ;;  %s1302_s26 = smov 0  }
   0xe   :  { %s1304_s27 = smov 0   ;;  %s1306_s28 = smov 0  }
   0xf LB: > { %1574 = sst [smem:[#allocation15_spill]] %s1217_s21  ;;  %s1333_s29 = sadd.s32 4294967295, %s1245_s28   ;;  %s1245_s28 = sphi %s1306_s28, %s27_s28   ;;  %s1241_s27 = sphi %s1304_s27, %s1603_s27   ;;  %s1237_s26 = sphi %s1302_s26, %s1602_s26   ;;  %s1233_s25 = sphi %s1300_s25, %s1601_s25   ;;  %s1229_s24 = sphi %s1298_s24, %s1600_s24   ;;  %s1225_s23 = sphi %s1296_s23, %s1599_s23   ;;  %s1221_s22 = sphi %s1294_s22, %s1598_s22   ;;  %s1217_s21 = sphi %s1292_s21, %s1597_s21  }
  0x10   : > { %s1560_s30 = sadd.s32 4294967294, %s1245_s28   ;;  %p61_p0 = scmp.ne.s32.totalorder %s1221_s22, %s1217_s21 }
  0x11   : > { %p1569_p1 = scmp.eq.s32.totalorder %s1333_s29, 0  ;;  %p156_p3 = scmp.eq.s32.totalorder %s1560_s30, 3 }
  0x12   : > { %p819_p5 = scmp.ge.s32.totalorder %s1245_s28, 1  ;;  %p219_p7 = scmp.lt.s32.totalorder %s1245_s28, 5 }
  0x13   : > { %p1344_p4 = por %p1569_p1, %p61_p0  ;;  %p1349_p6 = por %p156_p3, %p61_p0 }
  0x14   : > { %p1354_p8 = pnand %p819_p5, %p219_p7  ;;  %s1247_s10 = smov [#allocation5]  }
  0x15   : > { %s1576_s8 = scalar_select %p1349_p6, 1, 0 }
  0x16   : > { %s237_s11 = sshll.u32 %s1247_s10, 4  ;;  %p909_p9 = pneg %p1354_p8  ;;  %s238_s11 = int_to_ptr.vmem [resolvable:$true] %s237_s11 }
  0x17   : > { %1577 = sst [smem:[#allocation16_spill]] %s1576_s8  ;;  %s1046_s12 = scalar_lea.vmem %s238_s11, 3072 }
  0x18   : > { %p910_p10 = pnand %p909_p9, %p1569_p1  ;;  %p1047_p12 = scmp.ne.s32.totalorder %s238_s11, %s1046_s12 }
  0x19   : > { %p1054_p3 = scmp.lt.s32.totalorder %s238_s11, %s238_s11  ;;  %p1055_p2 = scmp.lt.s32.totalorder %s1046_s12, %s1046_s12 }
  0x1a   : > { %p1037_p11 = pneg %p910_p10 }
  0x1b   : > { %p1056_p6 = por %p1055_p2, %p1054_p3 }
  0x1c   : > { %p1049_p13 = pnand %p1047_p12, %p1037_p11 }
  0x1e   : > { %p1050_p0 = pneg %p1049_p13 }
  0x20   : > { %p1057_p5 = pnand %p1056_p6, %p1050_p0 }
  0x22   : > { %1060 = shalt.err (!%p1057_p5)
}
  0x23   : > { %s1248_s13 = smov 192   ;;  %s1249_s14 = smov 12  }
  0x24   : > { %s1579_s3 = sld [smem:[#allocation19_spill]]  ;;  %s36_s17 = sadd.s32 1, %s1237_s26 }
  0x25   : > { %p37_p2 = scmp.ge.s32.totalorder %s36_s17, 2  ;;  %s39_s18 = sadd.s32 1, %s1241_s27 }
  0x26   : > { %s48_s19 = sadd.s32 1, %s1225_s23  ;;  %p55_p6 = scmp.ne.s32.totalorder %s1225_s23, %s1221_s22 }
  0x27   : > { %s1605_s17 = smov (%p37_p2, %s36_s17), 0  ;;  %s1607_s18 = smov (!%p37_p2, %s39_s18), %s1241_s27 }
  0x28   : > { %1580 = sst [smem:[#allocation17_spill]] %s1605_s17  ;;  %s44_s20 = ssub.s32 %s1237_s26, %s1605_s17 }
  0x29   : > { %p56_p7 = scmp.eq.s32.totalorder %s1245_s28, 0  ;;  %p41_p9 = scmp.ge.s32.totalorder %s1607_s18, 2 }
  0x2a   : > { %912 = dma.hbm_to_vmem [thread:$0]  (!%p910_p10), %s1579_s3, 3072, %s238_s11, [#allocation6], %s1248_s13, %s1248_s13, %s1249_s14  }
  0x2b   : > { %p1581_p11 = scmp.eq.s32.totalorder %s1333_s29, 3  ;;  %p1382_p10 = por %p56_p7, %p55_p6 }
  0x2c   : > { %p928_p13 = scmp.lt.s32.totalorder %s1245_s28, 4  ;;  %s1609_s18 = smov (%p41_p9, %s1607_s18), 0 }
  0x2d   : > { %p1378_p12 = por %p1581_p11, %p55_p6  ;;  %s251_s12 = sand.u32 1, %s1225_s23  }
  0x2e   : > { %s823_s13 = sshll.u32 %s1241_s27, 1  ;;  %s43_s14 = ssub.s32 %s1241_s27, %s1609_s18 }
  0x2f   : > { %s1582_s10 = scalar_select %p1378_p12, 1, 0 }
  0x30   : > { %s45_s15 = sor.u32 %s44_s20, %s43_s14  ;;  %s822_s16 = sshll.u32 %s251_s12, 3 }
  0x31   : > { %1583 = sst [smem:[#allocation18_spill]] %s1582_s10  ;;  %p46_p0 = scmp.eq.s32.totalorder %s45_s15, 0 }
  0x32   : > { %s260_s30 = sadd.s32 %s1237_s26, %s823_s13  ;;  %s255_s3 = scalar_lea.vmem [#allocation2], %s822_s16 }
  0x33   : > { %s264_s17 = sshll.u32 %s255_s3, 4  ;;  %s824_s21 = sshll.u32 %s260_s30, 7  ;;  %s265_s17 = int_to_ptr.vmem [resolvable:$true] %s264_s17 }
  0x34   : > { %s1395_s8 = scalar_select %p46_p0, %s1225_s23, %s48_s19  }
  0x35   : > { %s262_s10 = scalar_lea.hbm %s1553_s0, %s824_s21  ;;  %p1404_p3 = pnand %p928_p13, %p1382_p10 }
  0x36   : > { %s252_s20 = scalar_lea.sflag [#allocation3], %s251_s12  ;;  %s1074_s13 = scalar_lea.vmem %s265_s17, 128 }
  0x37   : > { %p1063_p5 = pneg %p1404_p3  ;;  %p1075_p2 = scmp.ne.s32.totalorder %s265_s17, %s1074_s13 }
  0x38   : > { %s1250_s3 = smov [#allocation2]  }
  0x39   : > { %p1077_p6 = pnand %p1075_p2, %p1063_p5  ;;  %s1079_s30 = sshll.u32 %s1250_s3, 4  ;;  %s1080_s30 = int_to_ptr.vmem [resolvable:$false] %s1079_s30 }
  0x3a   : > { %s1081_s19 = scalar_lea.vmem %s1080_s30, 256  ;;  %p1082_p9 = scmp.lt.s32.totalorder %s265_s17, %s1080_s30 }
  0x3b   : > { %p1078_p7 = pneg %p1077_p6  ;;  %p1083_p11 = scmp.lt.s32.totalorder %s1081_s19, %s1074_s13 }
  0x3d   : > { %p1084_p0 = por %p1083_p11, %p1082_p9 }
  0x3f   : > { %p1085_p1 = pnand %p1084_p0, %p1078_p7 }
  0x41   : > { %1088 = shalt.err (!%p1085_p1)
}
  0x42   : > { %916 = dma.hbm_to_vmem [thread:$0]  (!%p1404_p3), %s262_s10, 128, %s265_s17, %s252_s20  }
  0x43   : > { %273 = sbr.rel (%p1354_p8) target bundleno = 644 (0x284), region = 36  ;;  %s1415_s4 = sand.u32 (!%p1354_p8), 1, %s1221_s22  }
  0x44   : > { %s826_s6 = sshll.u32 (!%p1354_p8), %s1415_s4, 3  ;;  %s276_s21 = scalar_lea.sflag (!%p1354_p8), [#allocation3], %s1415_s4 }
  0x45   : > { %s279_s11 = scalar_lea.vmem (!%p1354_p8), [#allocation2], %s826_s6 }
  0x48   : > { %1200 = dma.done.wait (%p1344_p4), %s276_s21, 128  }
  0x49   : > { %1202 = vsyncadd (%p1344_p4), %s276_s21, 4294967168  ;;  %p1586_p1 = scmp.eq.s32.totalorder %s1333_s29, 0 }
  0x4b   : > { %1204 = dma.done.wait (%p1586_p1), [#allocation6], 3072   ;;  %p1587_p10 = pmov %p1586_p1 }
  0x4c   : > { %v323_v0 = vld [vmem:[%s279_s11] sm:$0xff]  ;;  %v1251_v3 = vmov 0.0   ;;  %v1012_v14 = vld [vmem:[#allocation5 + $0x80] ss:$12 sps:$4 sm:$0xff]   ;;  %v1252_v22 = vmov 0   ;;  %vm1253_vm0 = vmmov 0  }
  0x4d   : > { %1206 = vsyncadd (%p1587_p10), [#allocation6], 4294964224  ;;  %326 = vadd.xlane.f32.xlu0 %v323_v0  ;;  %v1001_v1 = vld [vmem:[#allocation5 + $0xac] ss:$12 sps:$4 sm:$0xff]   ;;  %v1003_v2 = vld [vmem:[#allocation5 + $0xa8] ss:$12 sps:$4 sm:$0xff]   ;;  %877 = vmatprep.subr.bf16.mxu1 %v1251_v3 }
  0x4e   : > { %v1004_v4 = vld [vmem:[#allocation5 + $0xb0] ss:$12 sps:$4 sm:$0xff]   ;;  %v1005_v5 = vld [vmem:[#allocation5 + $0x94] ss:$12 sps:$4 sm:$0xff]   ;;  %513 = vmatprep.subr.bf16.mxu0 %v1001_v1  ;;  %v1008_v7 = vld [vmem:[#allocation5 + $0x98] ss:$12 sps:$4 sm:$0xff]   ;;  %545 = vmatprep.mubr.bf16.mxu0 %v1252_v22 }
  0x4f   : > { %514 = vmatpush1.bf16.msra.mxu0 %v1003_v2  ;;  %878 = vmatpush3.bf16.msra.mxu1 %v1004_v4  ;;  %v1007_v6 = vld [vmem:[#allocation5 + $0x90] ss:$12 sps:$4 sm:$0xff]   ;;  %v1011_v13 = vld [vmem:[#allocation5 + $0x78] ss:$12 sps:$4 sm:$0xff]   ;;  %v1015_v16 = vld [vmem:[#allocation5 + $0x60] ss:$12 sps:$4 sm:$0xff]  }
  0x50   : > { %515 = vmatprep.subr.bf16.mxu0 %v1005_v5  ;;  %879 = vmatprep.subr.bf16.mxu1 %v1251_v3  ;;  %v1009_v12 = vld [vmem:[#allocation5 + $0x7c] ss:$12 sps:$4 sm:$0xff]   ;;  %v1013_v15 = vld [vmem:[#allocation5 + $0x64] ss:$12 sps:$4 sm:$0xff]   ;;  %v1017_v18 = vld [vmem:[#allocation5 + $0x4c] ss:$12 sps:$4 sm:$0xff]  }
  0x51   : > { %v1016_v17 = vld [vmem:[#allocation5 + $0x68] ss:$12 sps:$4 sm:$0xff]   ;;  %v1020_v20 = vld [vmem:[#allocation5 + $0x50] ss:$12 sps:$4 sm:$0xff]   ;;  %893 = vmatprep.mubr.msk.bf16.mxu1 %vm1253_vm0, %v1251_v3  ;;  %v1024_v24 = vld [vmem:[#allocation5 + $0x38] ss:$12 sps:$4 sm:$0xff]  }
  0x52   : > { %v1019_v19 = vld [vmem:[#allocation5 + $0x48] ss:$12 sps:$4 sm:$0xff]   ;;  %v1023_v23 = vld [vmem:[#allocation5 + $0x30] ss:$12 sps:$4 sm:$0xff]   ;;  %v1027_v26 = vld [vmem:[#allocation5 + $0x18] ss:$12 sps:$4 sm:$0xff]  }
  0x53   : > { %516 = vmatpush1.bf16.msra.mxu0 %v1007_v6  ;;  %880 = vmatpush3.bf16.msra.mxu1 %v1008_v7  ;;  %v1021_v21 = vld [vmem:[#allocation5 + $0x34] ss:$12 sps:$4 sm:$0xff]   ;;  %v1025_v25 = vld [vmem:[#allocation5 + $0x1c] ss:$12 sps:$4 sm:$0xff]   ;;  %v1029_v28 = vld [vmem:[#allocation5 + $0x4] ss:$12 sps:$4 sm:$0xff]  }
  0x54   : > { %881 = vmatprep.subr.bf16.mxu1 %v1251_v3  ;;  %517 = vmatprep.subr.bf16.mxu0 %v1009_v12  ;;  %v1028_v27 = vld [vmem:[#allocation5 + $0x20] ss:$12 sps:$4 sm:$0xff]   ;;  %v1032_v30 = vld [vmem:[#allocation5 + $0x8] ss:$12 sps:$4 sm:$0xff]   ;;  %v831_v35 = vld [vmem:[%s1554_s1] ss:$0 sm:$0xff] }
  0x55   : > { %v1031_v29 = vld [vmem:[#allocation5] ss:$12 sps:$4 sm:$0xff]   ;;  %v832_v37 = vld [vmem:[%s1555_s2] ss:$0 sm:$0xff]  ;;  %s860_s10 = sshll.u32 %s1233_s25, 1  ;;  %s828_s12 = sshll.u32 %s1415_s4, 2 }
  0x56   : > { %s623_s14 = sadd.s32 %s1229_s24, %s860_s10  ;;  %s606_s15 = sand.u32 1, %s1333_s29  }
  0x57   : > { %518 = vmatpush1.bf16.msra.mxu0 %v1011_v13  ;;  %882 = vmatpush3.bf16.msra.mxu1 %v1012_v14  ;;  %s861_s16 = sshll.u32 %s623_s14, 6  ;;  %s314_s20 = scalar_lea.vmem [#allocation8], %s828_s12 }
  0x58   : > { %883 = vmatprep.subr.bf16.mxu1 %v1251_v3  ;;  %519 = vmatprep.subr.bf16.mxu0 %v1013_v15  ;;  %s642_s13 = sshll.u32 %s314_s20, 4  ;;  %s321_s3 = scalar_lea.vmem [#allocation10], %s828_s12  ;;  %s1442_s13 = int_to_ptr.vmem [resolvable:$true] %s642_s13 }
  0x59   : > { %s657_s30 = sshll.u32 %s321_s3, 4  ;;  %s307_s19 = scalar_lea.vmem [#allocation7], %s828_s12  ;;  %s1456_s30 = int_to_ptr.vmem [resolvable:$true] %s657_s30 }
  0x5a   : > { %s627_s6 = sshll.u32 %s307_s19, 4  ;;  %s1588_s5 = sld [smem:[#allocation21_spill]]  ;;  %s1449_s6 = int_to_ptr.vmem [resolvable:$true] %s627_s6 }
  0x5b   : > { %520 = vmatpush1.bf16.msra.mxu0 %v1015_v16  ;;  %884 = vmatpush3.bf16.msra.mxu1 %v1016_v17  ;;  %s1590_s9 = sld [smem:[#allocation20_spill]]  ;;  %s1458_s21 = scalar_lea.sflag [#allocation9], %s606_s15 }
  0x5c   : > { %521 = vmatprep.subr.bf16.mxu0 %v1017_v18  ;;  %885 = vmatprep.subr.bf16.mxu1 %v1251_v3  ;;  %s1591_s14 = sld [smem:[#allocation22_spill]]  ;;  %s1089_s11 = scalar_lea.vmem %s1442_s13, 64 }
  0x5d   : > { %p1090_p4 = scmp.ne.s32.totalorder %s1442_s13, %s1089_s11  ;;  %s1254_s29 = smov [#allocation8]  }
  0x5e   : > { %s1093_s7 = sshll.u32 %s1254_s29, 4  ;;  %s1094_s7 = int_to_ptr.vmem [resolvable:$false] %s1093_s7 }
  0x5f   : > { %522 = vmatpush1.bf16.msra.mxu0 %v1019_v19  ;;  %886 = vmatpush3.bf16.msra.mxu1 %v1020_v20  ;;  %p1091_p8 = pnand %p1090_p4, %p1378_p12  ;;  %p1096_p3 = scmp.lt.s32.totalorder %s1442_s13, %s1094_s7 }
  0x60   : > { %523 = vmatprep.subr.bf16.mxu0 %v1021_v21  ;;  %887 = vmatprep.subr.bf16.mxu1 %v1251_v3  ;;  %s1440_s25 = scalar_lea.hbm %s1588_s5, %s861_s16 }
  0x61   : > { %s1447_s17 = scalar_lea.hbm %s1590_s9, %s861_s16  ;;  %p1092_p13 = pneg %p1091_p8 }
  0x63   : > { %524 = vmatpush1.bf16.msra.mxu0 %v1023_v23  ;;  %888 = vmatpush3.bf16.msra.mxu1 %v1024_v24 }
  0x64   : > { %525 = vmatprep.subr.bf16.mxu0 %v1025_v25  ;;  %889 = vmatprep.subr.bf16.mxu1 %v1251_v3 }
  0x67   : > { %526 = vmatpush1.bf16.msra.mxu0 %v1027_v26  ;;  %890 = vmatpush3.bf16.msra.mxu1 %v1028_v27 }
  0x68   : > { %527 = vmatprep.subr.bf16.mxu0 %v1029_v28  ;;  %891 = vmatprep.subr.bf16.mxu1 %v1251_v3 }
  0x6b   : > { %528 = vmatpush1.bf16.msra.mxu0 %v1031_v29  ;;  %892 = vmatpush3.bf16.msra.mxu1 %v1032_v30 }
  0xd6   : > { %v327_v8 = vpop.xlane.xlu0 %326 }
  0xd7   : > { %v329_v9 = vmul.f32 0.0078125, %v327_v8 }
  0xd9   : > { %v330_v10 = vsub.f32 %v323_v0, %v329_v9 }
  0xdb   : > { %v331_v11 = vmul.f32 %v330_v10, %v330_v10 }
  0xdd   : > { %332 = vadd.xlane.f32.xlu0 %v331_v11 }
 0x166   : > { %v333_v31 = vpop.xlane.xlu0 %332 }
 0x167   : > { %v334_v32 = vmul.f32 0.0078125, %v333_v31 }
 0x169   : > { %v335_v33 = vadd.f32 1e-05, %v334_v32 }
 0x16b   : > { %1033 = vrsqrt.f32 %v335_v33 }
 0x178   : > { %v1034_v34 = vpop.eup %1033 }
 0x179   : > { %v337_v36 = vmul.f32 %v1034_v34, %v330_v10 }
 0x17b   : > { %v344_v38 = vmul.f32 %v831_v35, %v337_v36 }
 0x17d   : > { %v351_v39 = vadd.f32 %v832_v37, %v344_v38 }
 0x17f   : > { %v352_v40 = vpack.c.bf16 %v351_v39, %v351_v39 }
 0x181   : > { %546 = vmatmul.mubr.bf16.vlgmr.msra.gmra.mxu0 %v352_v40  ;;  %894 = vmatmul.mubr.bf16.vlgmr.msra.gmra.mxu1 %v352_v40 }
 0x241   : > { %v547_v41 = vpop.f32.mrf.mxu0  ;;  %v588_v42 = vpop.f32.mrf.mxu1 }
 0x242   : > { %v594_v43 = vmul.f32 0.088388346, %v547_v41  ;;  %v599_v44 = vpack.c.bf16 %v588_v42, %v588_v42 }
 0x243   : > { %v549_v45 = vpop.f32.mrf.mxu0  ;;  %v895_v46 = vpop.f32.mrf.mxu1 }
 0x244   : > { %v595_v47 = vpack.c.bf16 %v594_v43, %v594_v43  ;;  %600 = vst [vmem:[%s321_s3] sm:$0xf] %v599_v44  ;;  %v597_v48 = vpack.c.bf16 %v549_v45, %v549_v45  ;;  %s1454_s3 = scalar_lea.hbm %s1591_s14, %s861_s16 }
 0x245   : > { %v551_v49 = vpop.f32.mrf.mxu0  ;;  %v591_v50 = vpop.f32.mrf.mxu1 }
 0x246   : > { %596 = vst [vmem:[%s307_s19] sm:$0xf] %v595_v47  ;;  %598 = vst [vmem:[%s314_s20] sm:$0xf] %v597_v48  ;;  %s1095_s20 = scalar_lea.vmem %s1094_s7, 128 }
 0x247   : > { %v552_v51 = vpop.f32.mrf.mxu0  ;;  %v896_v52 = vpop.f32.mrf.mxu1  ;;  %p1097_p5 = scmp.lt.s32.totalorder %s1095_s20, %s1089_s11 }
 0x249   : > { %p1098_p2 = por %p1097_p5, %p1096_p3 }
 0x24b   : > { %p1099_p6 = pnand %p1098_p2, %p1092_p13 }
 0x24d   : > { %1102 = shalt.err (!%p1099_p6)
}
 0x24e   : > { %s1103_s15 = scalar_lea.hbm %s1440_s25, 64  ;;  %s1107_s10 = scalar_lea.hbm %s1588_s5, 256 }
 0x24f   : > { %p1104_p7 = scmp.ne.s32.totalorder %s1440_s25, %s1103_s15  ;;  %p1108_p0 = scmp.lt.s32.totalorder %s1440_s25, %s1588_s5 }
 0x250   : > { %p1109_p1 = scmp.lt.s32.totalorder %s1107_s10, %s1103_s15 }
 0x251   : > { %p1105_p9 = pnand %p1104_p7, %p1378_p12 }
 0x252   : > { %p1110_p10 = por %p1109_p1, %p1108_p0 }
 0x253   : > { %p1106_p11 = pneg %p1105_p9 }
 0x255   : > { %p1111_p4 = pnand %p1110_p10, %p1106_p11 }
 0x257   : > { %1114 = shalt.err (!%p1111_p4)
}
 0x258   : > { %904 = dma.vmem_to_hbm [thread:$0]  (%p1378_p12), %s1442_s13, 64, %s1440_s25, %s1458_s21  }
 0x259   : > { %s602_s11 = scalar_lea.sflag [#allocation4], %s1415_s4  ;;  %s1115_s7 = scalar_lea.vmem %s1449_s6, 64 }
 0x25a   : > { %p1116_p8 = scmp.ne.s32.totalorder %s1449_s6, %s1115_s7  ;;  %s1255_s20 = smov [#allocation7]  }
 0x25b   : > { %s1119_s15 = sshll.u32 %s1255_s20, 4  ;;  %s1120_s15 = int_to_ptr.vmem [resolvable:$false] %s1119_s15 }
 0x25c   : > { %p1117_p13 = pnand %p1116_p8, %p1378_p12  ;;  %s1121_s16 = scalar_lea.vmem %s1120_s15, 128 }
 0x25d   : > { %p1122_p5 = scmp.lt.s32.totalorder %s1449_s6, %s1120_s15  ;;  %p1123_p2 = scmp.lt.s32.totalorder %s1121_s16, %s1115_s7 }
 0x25e   : > { %p1118_p3 = pneg %p1117_p13 }
 0x25f   : > { %p1124_p6 = por %p1123_p2, %p1122_p5 }
 0x261   : > { %p1125_p7 = pnand %p1124_p6, %p1118_p3 }
 0x263   : > { %1128 = shalt.err (!%p1125_p7)
}
 0x264   : > { %s1129_s13 = scalar_lea.hbm %s1447_s17, 64  ;;  %s1133_s19 = scalar_lea.hbm %s1590_s9, 256 }
 0x265   : > { %p1130_p9 = scmp.ne.s32.totalorder %s1447_s17, %s1129_s13  ;;  %p1134_p1 = scmp.lt.s32.totalorder %s1447_s17, %s1590_s9 }
 0x266   : > { %p1135_p10 = scmp.lt.s32.totalorder %s1133_s19, %s1129_s13 }
 0x267   : > { %p1131_p11 = pnand %p1130_p9, %p1378_p12 }
 0x268   : > { %p1136_p4 = por %p1135_p10, %p1134_p1 }
 0x269   : > { %p1132_p0 = pneg %p1131_p11 }
 0x26b   : > { %p1137_p8 = pnand %p1136_p4, %p1132_p0 }
 0x26d   : > { %1140 = shalt.err (!%p1137_p8)
}
 0x26e   : > { %903 = dma.vmem_to_hbm [thread:$0]  (%p1378_p12), %s1449_s6, 64, %s1447_s17, %s602_s11  }
 0x26f   : > { %s1141_s29 = scalar_lea.vmem %s1456_s30, 64  ;;  %s1256_s7 = smov [#allocation10]  }
 0x270   : > { %p1142_p13 = scmp.ne.s32.totalorder %s1456_s30, %s1141_s29  ;;  %s1145_s20 = sshll.u32 %s1256_s7, 4  ;;  %s1146_s20 = int_to_ptr.vmem [resolvable:$false] %s1145_s20 }
 0x271   : > { %s1147_s15 = scalar_lea.vmem %s1146_s20, 128  ;;  %p1148_p2 = scmp.lt.s32.totalorder %s1456_s30, %s1146_s20 }
 0x272   : > { %p1143_p3 = pnand %p1142_p13, %p1378_p12  ;;  %p1149_p6 = scmp.lt.s32.totalorder %s1147_s15, %s1141_s29 }
 0x274   : > { %p1144_p5 = pneg %p1143_p3  ;;  %p1150_p7 = por %p1149_p6, %p1148_p2 }
 0x276   : > { %p1151_p9 = pnand %p1150_p7, %p1144_p5 }
 0x278   : > { %1154 = shalt.err (!%p1151_p9)
}
 0x279   : > { %s1155_s16 = scalar_lea.hbm %s1454_s3, 64  ;;  %s1159_s11 = scalar_lea.hbm %s1591_s14, 256 }
 0x27a   : > { %p1156_p11 = scmp.ne.s32.totalorder %s1454_s3, %s1155_s16  ;;  %p1160_p10 = scmp.lt.s32.totalorder %s1454_s3, %s1591_s14 }
 0x27b   : > { %p1161_p4 = scmp.lt.s32.totalorder %s1159_s11, %s1155_s16 }
 0x27c   : > { %p1157_p0 = pnand %p1156_p11, %p1378_p12 }
 0x27d   : > { %p1162_p8 = por %p1161_p4, %p1160_p10 }
 0x27e   : > { %p1158_p1 = pneg %p1157_p0 }
 0x280   : > { %p1163_p13 = pnand %p1162_p8, %p1158_p1 }
 0x282   : > { %1166 = shalt.err (!%p1163_p13)
}
 0x283   : > { %905 = dma.vmem_to_hbm [thread:$0]  (%p1378_p12), %s1456_s30, 64, %s1454_s3, %s1458_s21  }
 0x284 PF: > { %s1592_s25 = sld [smem:[#allocation15_spill]]  ;;  %p930_p3 = scmp.ge.s32.totalorder %s1245_s28, 2 }
 0x285   : > { %s1593_s19 = sld [smem:[#allocation16_spill]] }
 0x28a   : > { %s669_s10 = sand.u32 1, %s1592_s25  }
 0x28b   : > { %p1594_p5 = scmp.ne.s32.totalorder %s1593_s19, 0  ;;  %s670_s12 = scalar_lea.sflag [#allocation4], %s669_s10 }
 0x28d   : > { %p918_p2 = pnand %p930_p3, %p1594_p5 }
 0x28f   : > { %p919_p6 = pneg %p918_p2 }
 0x291   : > { %1208 = dma.done.wait (%p919_p6), %s670_s12, 64  }
 0x292   : > { %1210 = vsyncadd (%p919_p6), %s670_s12, 4294967232  ;;  %s1595_s29 = sadd.s32 4294967294, %s1245_s28  }
 0x293   : > { %s678_s7 = sand.u32 1, %s1595_s29  }
 0x294   : > { %s679_s24 = scalar_lea.sflag [#allocation9], %s678_s7 }
 0x295   : > { %1212 = dma.done.wait (%p919_p6), %s679_s24, 128  }
 0x296   : > { %1214 = vsyncadd (%p919_p6), %s679_s24, 4294967168  ;;  %s27_s28 = sadd.s32 1, %s1245_s28   ;;  %s1596_s30 = sld [smem:[#allocation17_spill]] }
 0x297   : > { %p24_p12 = scmp.ge.s32.totalorder %s27_s28, 6   ;;  %s1597_s21 = smov %s1221_s22 }
 0x298   : > { %s1598_s22 = smov %s1225_s23  ;;  %s1599_s23 = smov %s1395_s8 }
 0x299   : > { %s1600_s24 = smov %s1237_s26  ;;  %s1601_s25 = smov %s1241_s27 }
 0x29a   : > { %s1603_s27 = smov %s1609_s18  ;;  %26 = sbr.rel (!%p24_p12) target bundleno = 15 (0xf), region = 117 }
 0x29c   : > { %s1602_s26 = smov %s1596_s30 }
 0x29f   :  { %693 = vsyncpa [#allocation3], 1 }
 0x2a0   :  { %695 = vsyncpa [#allocation3 + $0x1], 1 }
 0x2a1   :  { %696 = vsyncpa [#allocation6], 1 }
 0x2a2   :  { %697 = vsyncpa [#allocation4], 1 }
 0x2a3   :  { %699 = vsyncpa [#allocation4 + $0x1], 1 }
 0x2a4   :  { %700 = vsyncpa [#allocation9], 1 }
 0x2a5   :  { %702 = vsyncpa [#allocation9 + $0x1], 1 }

</bundles_post_ra>
